<compile_context>
chip_gen: v7x
topology: tpu7x:2x2x1
jax: 0.10.0
libtpu: 0.0.40
codegen_flags: <defaults>
</compile_context>

<pallas_src>
import math
import functools

import jax
import jax.numpy as jnp
from jax.experimental import pallas as pl
from jax.experimental.pallas import tpu as pltpu

_AMP = 1.0 / math.sqrt(2.0 * math.pi)
_LOG_INV_AMP = 0.5 * math.log(2.0 * math.pi)   # == -log(_AMP)
_SQRT2 = math.sqrt(2.0)
_EPS = 1e-9
_LANES = 128


def _round_up(x, m):
    return ((x + m - 1) // m) * m


def _cdiv(a, b):
    return -(-a // b)


def _rle_loss_kernel(sigma_ref, have_ref, scale_ref, out_ref, acc_ref, *,
                     batch, tile_b, inner_tiles, compute_dtype, approx):
    """One (split, batch-tile) step of the RLE-light loss.

    sigma_ref: (J, tile_b)   native dtype, VMEM (batch on lanes)
    have_ref:  (1, tile_b)   f32, VMEM (broadcast over J sublanes)
    scale_ref: (1,)          f32, SMEM  (loss_weight * inv_count / sqrt(2))
    out_ref:   (1, 8, 128)   f32, VMEM  (per-split partial, splatted scalar)
    acc_ref:   (J, tile_b)   f32, VMEM scratch (vector-shaped partial sums)
    """
    c = pl.program_id(0)          # split index (outer, "parallel")
    i = pl.program_id(1)          # batch tile within the split ("arbitrary")

    @pl.when(i == 0)
    def _init():
        acc_ref[...] = jnp.zeros_like(acc_ref)

    # Inputs stay narrow in HBM; upcast in-kernel.  compute_dtype=bfloat16 is
    # an optional v6e/v7x EUP-throughput path (keep float32 on v5e).
    sigma = sigma_ref[...].astype(compute_dtype)           # (J, tile_b)
    have = have_ref[...].astype(compute_dtype)             # (1, tile_b)

    # log(sigma/amp) == log(sigma) + 0.5*log(2*pi).  sqrt(2) and the 1e-9
    # epsilon are folded out of the per-element path (scale / rescaled eps).
    numer = (jnp.log(sigma) + _LOG_INV_AMP) * have
    recip = pl.reciprocal(sigma + (_EPS / _SQRT2), approx=approx)
    loss = (numer * recip).astype(jnp.float32)              # (J, tile_b)

    # Mask lanes past the true batch size: the last tile can be ragged and its
    # out-of-bounds lanes may hold arbitrary bytes (log() -> NaN).  The select
    # happens AFTER the math, so garbage never reaches the accumulator.
    start = (c * inner_tiles + i) * tile_b
    lane = jax.lax.broadcasted_iota(jnp.int32, (1, tile_b), 1)
    valid = (start + lane) < batch                           # (1, tile_b)
    acc_ref[...] += jnp.where(valid, loss, 0.0)

    @pl.when(i == pl.num_programs(1) - 1)
    def _finalize():
        # Single XLU full-reduce + scaling, once per split, in the epilogue.
        total = jnp.sum(acc_ref[...]) * scale_ref[0]
        out_ref[...] = jnp.broadcast_to(total, out_ref.shape)


def _choose_tiling(batch, n_joints, tile_b_req, n_split_req, sigma_itemsize):
    """Pick (tile_b, n_split, inner_tiles); grid = (n_split, inner_tiles).

    Guarantees n_split*inner_tiles*tile_b >= batch and
    (n_split*inner_tiles - 1)*tile_b < batch, so every grid step touches at
    least one valid lane (no fully out-of-bounds tiles).
    """
    # Per-lane VMEM cost: double-buffered sigma blocks + f32 accumulator
    # (sublanes padded to 8) + double-buffered (1, tile_b) have blocks.
    j_pad = _round_up(max(int(n_joints), 1), 8)
    bytes_per_lane = j_pad * (2 * sigma_itemsize + 4) + 2 * 8 * 4
    vmem_budget = 14 * 1024 * 1024          # headroom under the 32 MiB limit (v5e-safe)
    tile_cap = max(_LANES, (vmem_budget // bytes_per_lane) // _LANES * _LANES)

    tile_b = min(int(tile_b_req), tile_cap, _round_up(batch, _LANES))
    tile_b = max(_LANES, _round_up(tile_b, _LANES))
    num_tiles = _cdiv(batch, tile_b)

    n_split = max(1, int(n_split_req))
    if n_split > 1 and num_tiles >= n_split:
        total = _round_up(num_tiles, n_split)
        tile_b2 = _round_up(_cdiv(batch, total), _LANES)
        if (total - 1) * tile_b2 < batch:   # every tile holds >= 1 valid lane
            return tile_b2, n_split, total // n_split
    return tile_b, 1, num_tiles


def rle_loss_light(sigma, have_jts3d, *, loss_weight=1.0, reduction="mean",
                   tile_b=32768, n_split=2, sigma_transposed=False,
                   compute_dtype=jnp.float32, approx_reciprocal=True,
                   min_pallas_elems=1 << 18):
    """Pallas TPU implementation of RLELossLight.forward.  Returns a f32 scalar."""
    if reduction not in ("mean", "sum"):
        # TODO(synk): reduction='none' returns the per-element (B, J, 1) tensor;
        # only the scalar 'mean'/'sum' paths are implemented in this kernel.
        raise NotImplementedError("reduction must be 'mean' or 'sum'")

    if not sigma_transposed and sigma.ndim != 2:
        sigma = sigma.reshape(sigma.shape[0], -1)

    if sigma_transposed:
        n_joints, batch = sigma.shape        # already (J, B): no wrapper copy
    else:
        batch, n_joints = sigma.shape        # (B, J)

    inv_count = 1.0 / float(batch * n_joints) if reduction == "mean" else 1.0
    have_row = have_jts3d.reshape(1, batch).astype(jnp.float32)   # tiny (1, B)

    # Small-problem fast path: the fused XLA elementwise+reduce beats a kernel
    # launch (plus the layout transpose) at these sizes.
    if batch * n_joints < min_pallas_elems:
        s = sigma.astype(jnp.float32)
        h = have_row if sigma_transposed else have_row.reshape(batch, 1)
        loss = (jnp.log(s) + _LOG_INV_AMP) * h / (_SQRT2 * s + _EPS)
        return jnp.sum(loss) * (inv_count * loss_weight)

    if sigma_transposed:
        sigma_t = sigma
    else:
        # One XLA transpose copy (~2 extra HBM passes).  Callers that can emit
        # sigma as (J, B) upstream should pass sigma_transposed=True instead.
        sigma_t = sigma.T                    # (J, B)

    tile, n_split_eff, inner = _choose_tiling(
        batch, n_joints, tile_b, n_split, sigma.dtype.itemsize)

    # Runtime SMEM scalar: loss_weight / reduction changes never recompile.
    scale = jnp.full((1,), loss_weight * inv_count / _SQRT2, dtype=jnp.float32)

    kernel = functools.partial(
        _rle_loss_kernel, batch=batch, tile_b=tile, inner_tiles=inner,
        compute_dtype=compute_dtype, approx=approx_reciprocal)

    partials = pl.pallas_call(
        kernel,
        out_shape=jax.ShapeDtypeStruct((n_split_eff, 8, 128), jnp.float32),
        grid_spec=pltpu.PrefetchScalarGridSpec(
            num_scalar_prefetch=0,
            grid=(n_split_eff, inner),
            in_specs=[
                # sigma: (J, tile) lane-dense batch blocks
                pl.BlockSpec((n_joints, tile), lambda c, i: (0, c * inner + i)),
                # have: (1, tile) block, broadcast over J sublanes in-kernel
                pl.BlockSpec((1, tile), lambda c, i: (0, c * inner + i)),
                # scale: untiled SMEM scalar
                pl.BlockSpec(memory_space=pltpu.MemorySpace.SMEM),
            ],
            # One (1, 8, 128) partial per split; each core writes only its own
            # block (safe under megacore), wrapper sums the handful of scalars.
            out_specs=pl.BlockSpec((1, 8, 128), lambda c, i: (c, 0, 0)),
            scratch_shapes=[pltpu.VMEM((n_joints, tile), jnp.float32)],
        ),
        compiler_params=pltpu.CompilerParams(
            dimension_semantics=("parallel", "arbitrary"),
            vmem_limit_bytes=32 * 1024 * 1024),
    )(sigma_t, have_row, scale)

    return jnp.sum(partials[:, 0, 0])


def _reference(sigma, have_jts3d, loss_weight=1.0, reduction="mean"):
    """Pure-JAX reference mirroring the PyTorch forward (computed in f32)."""
    b, j = sigma.shape[0], sigma.shape[1]
    s = sigma.reshape(b, j, 1).astype(jnp.float32)
    h = have_jts3d.reshape(-1, 1, 1).astype(jnp.float32)
    loss = jnp.log(s / _AMP) * h / (_SQRT2 * s + _EPS)
    loss = loss.mean() if reduction == "mean" else loss.sum()
    return loss * loss_weight


if __name__ == "__main__":
    key = jax.random.PRNGKey(0)
    k1, k2, k3, k4 = jax.random.split(key, 4)

    # Case 1: small f32 problem forced onto the Pallas path (single split, one
    # ragged 384-lane tile) -> exercises the in-kernel lane masking.
    B1, J1 = 300, 17
    sigma1 = jax.random.uniform(k1, (B1, J1), jnp.float32, minval=0.05, maxval=1.5)
    have1 = (jax.random.uniform(k2, (B1,)) > 0.3).astype(jnp.float32)
    out1 = jax.block_until_ready(
        rle_loss_light(sigma1, have1, loss_weight=1.0, reduction="mean",
                       min_pallas_elems=0))
    ref1 = _reference(sigma1, have1, 1.0, "mean")
    # Tolerance covers the EUP approx reciprocal (use approx_reciprocal=False
    # for strict parity with the Torch loss).
    assert jnp.allclose(out1, ref1, rtol=5e-3, atol=2e-2), (out1, ref1)

    # Case 2: bf16 sigma + bool mask, reduction='sum', small tile + 2-way split
    # -> exercises the (parallel, arbitrary) grid, per-split partials, the
    # accumulator epilogue and the ragged last tile.
    B2, J2 = 1000, 16
    sigma2 = jax.random.uniform(k3, (B2, J2), jnp.float32,
                                minval=0.05, maxval=1.5).astype(jnp.bfloat16)
    have2 = jax.random.uniform(k4, (B2,)) > 0.3
    out2 = jax.block_until_ready(
        rle_loss_light(sigma2, have2, loss_weight=2.0, reduction="sum",
                       tile_b=256, n_split=2, min_pallas_elems=0))
    ref2 = _reference(sigma2, have2, 2.0, "sum")
    assert jnp.allclose(out2, ref2, rtol=1e-2, atol=2.0), (out2, ref2)

    # Case 3: tiny problem -> the default small-problem XLA fast path.
    out3 = jax.block_until_ready(rle_loss_light(sigma1[:4], have1[:4]))
    ref3 = _reference(sigma1[:4], have1[:4])
    assert jnp.allclose(out3, ref3, rtol=1e-5, atol=1e-6), (out3, ref3)

    print("KERNEL_OK")
</pallas_src>

<mosaic_0001>
module attributes {stable_mosaic.version = 11 : i64} {
  func.func @_rle_loss_kernel(%arg0: i32, %arg1: i32, %arg2: memref<17x384xf32, #tpu.memory_space<vmem>>, %arg3: memref<1x384xf32, #tpu.memory_space<vmem>>, %arg4: memref<1xf32, #tpu.memory_space<smem>>, %arg5: memref<1x8x128xf32, #tpu.memory_space<vmem>>, %arg6: memref<17x384xf32, #tpu.memory_space<vmem>>) attributes {dimension_semantics = [#tpu.dimension_semantics<parallel>, #tpu.dimension_semantics<arbitrary>], iteration_bounds = array<i64: 1, 1>, scalar_prefetch = 0 : i64, scratch_operands = 1 : i64, tpu.core_type = #tpu.core_type<tc>, window_params = [{transform_indices = @transform_0, window_bounds = array<i64: 17, 384>}, {transform_indices = @transform_1, window_bounds = array<i64: 1, 384>}, {transform_indices = @transform_2, window_bounds = array<i64: 1>}, {transform_indices = @transform_3, window_bounds = array<i64: 1, 8, 128>}]} {
    %c0_i32 = arith.constant 0 : i32
    %0 = arith.cmpi eq, %arg1, %c0_i32 : i32
    %1 = arith.extui %0 : i1 to i32
    %c0_i32_0 = arith.constant 0 : i32
    %2 = arith.cmpi ne, %1, %c0_i32_0 : i32
    scf.if %2 {
      %cst_12 = arith.constant 0.000000e+00 : f32
      %32 = vector.broadcast %cst_12 : f32 to vector<17x384xf32>
      %c0_13 = arith.constant 0 : index
      %c0_14 = arith.constant 0 : index
      %33 = vector.load %arg6[%c0_13, %c0_14] : memref<17x384xf32, #tpu.memory_space<vmem>>, vector<17x384xf32>
      tpu.vector_store %arg6[%c0_13, %c0_14], %32 {strides = array<i32>} : memref<17x384xf32, #tpu.memory_space<vmem>>, vector<17x384xf32>,
    } else {
    }
    %c0 = arith.constant 0 : index
    %c0_1 = arith.constant 0 : index
    %3 = vector.load %arg2[%c0, %c0_1] : memref<17x384xf32, #tpu.memory_space<vmem>>, vector<17x384xf32>
    %c0_2 = arith.constant 0 : index
    %c0_3 = arith.constant 0 : index
    %4 = vector.load %arg3[%c0_2, %c0_3] : memref<1x384xf32, #tpu.memory_space<vmem>>, vector<1x384xf32>
    %5 = math.log %3 : vector<17x384xf32>
    %cst = arith.constant 0.918938517 : f32
    %6 = vector.broadcast %cst : f32 to vector<17x384xf32>
    %7 = arith.addf %5, %6 : vector<17x384xf32>
    %8 = vector.broadcast %4 : vector<1x384xf32> to vector<17x384xf32>
    %9 = arith.mulf %7, %8 : vector<17x384xf32>
    %cst_4 = arith.constant 7.07106762E-10 : f32
    %10 = vector.broadcast %cst_4 : f32 to vector<17x384xf32>
    %11 = arith.addf %3, %10 : vector<17x384xf32>
    %12 = tpu.reciprocal %11 {approx = true} : vector<17x384xf32> -> vector<17x384xf32>
    %13 = arith.mulf %9, %12 : vector<17x384xf32>
    %c1_i32 = arith.constant 1 : i32
    %14 = arith.muli %arg0, %c1_i32 : i32
    %15 = arith.addi %14, %arg1 : i32
    %c384_i32 = arith.constant 384 : i32
    %16 = arith.muli %15, %c384_i32 : i32
    %17 = tpu.iota {dimensions = array<i32: 1>} : vector<1x384xi32>
    %18 = vector.broadcast %16 : i32 to vector<1x384xi32>
    %19 = arith.addi %18, %17 : vector<1x384xi32>
    %c300_i32 = arith.constant 300 : i32
    %20 = vector.broadcast %c300_i32 : i32 to vector<1x384xi32>
    %21 = arith.cmpi slt, %19, %20 : vector<1x384xi32>
    %c0_5 = arith.constant 0 : index
    %c0_6 = arith.constant 0 : index
    %22 = vector.load %arg6[%c0_5, %c0_6] : memref<17x384xf32, #tpu.memory_space<vmem>>, vector<17x384xf32>
    %cst_7 = arith.constant 0.000000e+00 : f32
    %23 = vector.shape_cast %21 : vector<1x384xi1> to vector<1x384xi1>
    %24 = vector.broadcast %23 : vector<1x384xi1> to vector<17x384xi1>
    %25 = vector.broadcast %cst_7 : f32 to vector<17x384xf32>
    %26 = arith.select %24, %13, %25 : vector<17x384xi1>, vector<17x384xf32>
    %27 = arith.addf %22, %26 : vector<17x384xf32>
    %c0_8 = arith.constant 0 : index
    %c0_9 = arith.constant 0 : index
    %28 = vector.load %arg6[%c0_8, %c0_9] : memref<17x384xf32, #tpu.memory_space<vmem>>, vector<17x384xf32>
    tpu.vector_store %arg6[%c0_8, %c0_9], %27 {strides = array<i32>} : memref<17x384xf32, #tpu.memory_space<vmem>>, vector<17x384xf32>,
    %c0_i32_10 = arith.constant 0 : i32
    %29 = arith.cmpi eq, %arg1, %c0_i32_10 : i32
    %30 = arith.extui %29 : i1 to i32
    %c0_i32_11 = arith.constant 0 : i32
    %31 = arith.cmpi ne, %30, %c0_i32_11 : i32
    scf.if %31 {
      %c0_12 = arith.constant 0 : index
      %c0_13 = arith.constant 0 : index
      %32 = vector.load %arg6[%c0_12, %c0_13] : memref<17x384xf32, #tpu.memory_space<vmem>>, vector<17x384xf32>
      %33 = vector.shape_cast %32 : vector<17x384xf32> to vector<1x17x384xf32>
      %cst_14 = arith.constant dense<0.000000e+00> : vector<1xf32>
      %34 = vector.multi_reduction <add>, %33, %cst_14 [1, 2] : vector<1x17x384xf32> to vector<1xf32>
      %35 = vector.shape_cast %34 : vector<1xf32> to vector<1x1x1xf32>
      %36 = vector.extract %35[0, 0, 0] : f32 from vector<1x1x1xf32>
      %c0_15 = arith.constant 0 : index
      %37 = memref.load %arg4[%c0_15] : memref<1xf32, #tpu.memory_space<smem>>
      %38 = arith.mulf %36, %37 : f32
      %39 = vector.broadcast %38 : f32 to vector<1x8x128xf32>
      %c0_16 = arith.constant 0 : index
      %c0_17 = arith.constant 0 : index
      %c0_18 = arith.constant 0 : index
      %40 = vector.load %arg5[%c0_16, %c0_17, %c0_18] : memref<1x8x128xf32, #tpu.memory_space<vmem>>, vector<1x8x128xf32>
      tpu.vector_store %arg5[%c0_16, %c0_17, %c0_18], %39 {strides = array<i32>} : memref<1x8x128xf32, #tpu.memory_space<vmem>>, vector<1x8x128xf32>,
    } else {
    }
    return
  }
  func.func @transform_0(%arg0: i32, %arg1: i32) -> (i32, i32) {
    %c1_i32 = arith.constant 1 : i32
    %0 = arith.muli %arg0, %c1_i32 : i32
    %1 = arith.addi %0, %arg1 : i32
    %c0_i32 = arith.constant 0 : i32
    %c0_i32_0 = arith.constant 0 : i32
    return %c0_i32, %1 : i32, i32
  }
  func.func @transform_1(%arg0: i32, %arg1: i32) -> (i32, i32) {
    %c1_i32 = arith.constant 1 : i32
    %0 = arith.muli %arg0, %c1_i32 : i32
    %1 = arith.addi %0, %arg1 : i32
    %c0_i32 = arith.constant 0 : i32
    %c0_i32_0 = arith.constant 0 : i32
    return %c0_i32, %1 : i32, i32
  }
  func.func @transform_2(%arg0: i32, %arg1: i32) -> i32 {
    %c0_i32 = arith.constant 0 : i32
    %c0_i32_0 = arith.constant 0 : i32
    return %c0_i32 : i32
  }
  func.func @transform_3(%arg0: i32, %arg1: i32) -> (i32, i32, i32) {
    %c0_i32 = arith.constant 0 : i32
    %c0_i32_0 = arith.constant 0 : i32
    %c0_i32_1 = arith.constant 0 : i32
    return %arg0, %c0_i32, %c0_i32_0 : i32, i32, i32
  }
}

</mosaic_0001>

<bundles_post_ra>
// kernel: tpu_custom_call.1
= control target key start
LH: loop header
LB: loop body
LE: loop exit
PB: predicated region body
PF: predicated region fallthrough
CT: control target
= control target key end

     0   :  { %9 = vsyncpa [#allocation5], 0  ;;  %s416_s0 = inlined_call_operand.hbm [shape: f32[17,300], index: 0, kind: input, shape index: {}]   ;;  %s417_s1 = inlined_call_operand.vmem [shape: f32[1,300], index: 1, kind: input, shape index: {}]   ;;  %s418_s2 = inlined_call_operand.<no memory space> [shape: f32[1], index: 2, kind: input, shape index: {}]   ;;  %s419_s3 = inlined_call_operand.hbm [shape: f32[1,8,128], index: 3, kind: output, shape index: {}]  }
   0x1   :  { %10 = vsyncpa [#allocation6], 0  ;;  %s358_s12 = smov [#allocation4]   ;;  %s310_s16 = scalar_lea.hbm %s416_s0, 1152 }
   0x2   :  { %s20_s13 = sshll.u32 %s358_s12, 4  ;;  %p311_p0 = scmp.ne.s32.totalorder %s416_s0, %s310_s16  ;;  %s21_s13 = int_to_ptr.vmem [resolvable:$true] %s20_s13 }
   0x3   :  { %p314_p1 = scmp.lt.u32.totalorder %s310_s16, %s416_s0 }
   0x5   :  { %p316_p2 = pnand %p314_p1, %p311_p0 }
   0x7   :  { %319 = shalt.err (!%p316_p2)
}
   0x8   :  { %s320_s21 = scalar_lea.vmem %s21_s13, 1152  ;;  %p325_p4 = scmp.lt.s32.totalorder %s21_s13, %s21_s13 }
   0x9   :  { %p321_p3 = scmp.ne.s32.totalorder %s21_s13, %s320_s21  ;;  %p326_p5 = scmp.lt.s32.totalorder %s320_s21, %s320_s21 }
   0xb   :  { %p327_p6 = por %p326_p5, %p325_p4 }
   0xd   :  { %p328_p7 = pnand %p327_p6, %p321_p3 }
   0xf   :  { %331 = shalt.err (!%p328_p7)
}
  0x10   :  { %s359_s22 = smov 384   ;;  %s360_s23 = smov 24  }
  0x11   :  { %26 = dma.hbm_to_vmem [thread:$0]  %s416_s0, 1152, %s21_s13, [#allocation5], %s359_s22, %s359_s22, %s360_s23  }
  0x12   :  { %354 = dma.done.wait [#allocation5], 1152  }
  0x13   :  { %355 = vsyncadd [#allocation5], 4294966144  ;;  %v361_v0 = vmov 0.0   ;;  %v68_v1 = vld [vmem:[#allocation4] sm:$0xff]  ;;  %v69_v2 = vld [vmem:[#allocation4 + $0x8] sm:$0xff]  ;;  %v106_v4 = vlaneseq  ;;  %vm229_vm1 = vcmask 1040384  }
  0x14   :  { %65 = vst [vmem:[#allocation2 + $0x30] sm:$0x1] %v361_v0  ;;  %66 = vst [vmem:[#allocation2 + $0x38] sm:$0x1] %v361_v0  ;;  %v70_v3 = vld [vmem:[#allocation4 + $0x10] sm:$0xff]  ;;  %v71_v5 = vld [vmem:[#allocation4 + $0x18] sm:$0xff]  ;;  %274 = vlog2.f32 %v68_v1 }
  0x15   :  { %67 = vst [vmem:[#allocation2 + $0x40] sm:$0x1] %v361_v0  ;;  %v72_v6 = vld [vmem:[#allocation4 + $0x20] sm:$0xff]  ;;  %276 = vlog2.f32 %v69_v2  ;;  %v73_v7 = vld [vmem:[#allocation4 + $0x28] sm:$0xff]  ;;  %v74_v8 = vld [vmem:[#allocation4 + $0x30] sm:$0x1] }
  0x16   :  { %278 = vlog2.f32 %v70_v3  ;;  %v107_v9 = vshrl.u32 %v106_v4, 7  ;;  %v75_v10 = vld [vmem:[#allocation4 + $0x38] sm:$0x1]  ;;  %v76_v11 = vld [vmem:[#allocation4 + $0x40] sm:$0x1]  ;;  %v160_v23 = vand.u32 127, %v106_v4 }
  0x17   :  { %280 = vlog2.f32 %v71_v5  ;;  %v130_v12 = vadd.f32 7.0710676e-10, %v68_v1  ;;  %v131_v13 = vadd.f32 7.0710676e-10, %v69_v2  ;;  %v132_v15 = vadd.f32 7.0710676e-10, %v70_v3 }
  0x18   :  { %282 = vlog2.f32 %v72_v6  ;;  %v108_v14 = vsub.s32 0, %v107_v9  ;;  %v77_v16 = vld [vmem:[%s417_s1] sm:$0x7]  ;;  %v112_v17 = vsub.s32 1, %v107_v9  ;;  %v133_v18 = vadd.f32 7.0710676e-10, %v71_v5 }
  0x19   :  { %284 = vlog2.f32 %v73_v7  ;;  %v134_v19 = vadd.f32 7.0710676e-10, %v72_v6  ;;  %v116_v21 = vsub.s32 2, %v107_v9  ;;  %v135_v22 = vadd.f32 7.0710676e-10, %v73_v7  ;;  %s362_s1 = smov [#allocation7]  }
  0x1a   :  { %286 = vlog2.f32 %v74_v8  ;;  %v109_v26 = vrot.slane %v77_v16, %v108_v14  ;;  %v136_v27 = vadd.f32 7.0710676e-10, %v74_v8  ;;  %v113_v30 = vrot.slane %v77_v16, %v112_v17  ;;  %s255_s27 = sshll.u32 %s362_s1, 4  ;;  %s256_s27 = int_to_ptr.vmem [resolvable:$true] %s255_s27 }
  0x1b   :  { %288 = vlog2.f32 %v75_v10  ;;  %v137_v31 = vadd.f32 7.0710676e-10, %v75_v10  ;;  %v138_v35 = vadd.f32 7.0710676e-10, %v76_v11  ;;  %v117_v39 = vrot.slane %v77_v16, %v116_v21  ;;  %v176_v16 = vld [vmem:[#allocation2 + $0x30] sm:$0x1]  ;;  %p337_p9 = scmp.lt.s32.totalorder %s256_s27, %s256_s27 }
  0x1c   :  { %290 = vlog2.f32 %v76_v11  ;;  %v162_v43 = vadd.s32 256, %v160_v23  ;;  %s332_s5 = scalar_lea.vmem %s256_s27, 128 }
  0x1d   :  { %292 = vrcp.f32 %v130_v12  ;;  %p333_p8 = scmp.ne.s32.totalorder %s256_s27, %s332_s5  ;;  %p338_p10 = scmp.lt.s32.totalorder %s332_s5, %s332_s5 }
  0x1e   :  { %v275_v20 = vpop.eup %274  ;;  %294 = vrcp.f32 %v131_v13  ;;  %vm169_vm0 = vcmp.lt.s32.totalorder %v162_v43, 300 }
  0x1f   :  { %v277_v24 = vpop.eup %276  ;;  %v79_v25 = vmul.f32 0.6931472, %v275_v20  ;;  %296 = vrcp.f32 %v132_v15  ;;  %v177_v20 = vld [vmem:[#allocation2 + $0x38] sm:$0x1]  ;;  %p339_p11 = por %p338_p10, %p337_p9 }
  0x20   :  { %v279_v28 = vpop.eup %278  ;;  %v81_v29 = vmul.f32 0.6931472, %v277_v24  ;;  %298 = vrcp.f32 %v133_v18 }
  0x21   :  { %v281_v32 = vpop.eup %280  ;;  %v83_v33 = vmul.f32 0.6931472, %v279_v28  ;;  %v96_v34 = vadd.f32 0.9189385, %v79_v25  ;;  %300 = vrcp.f32 %v134_v19  ;;  %p340_p12 = pnand %p339_p11, %p333_p8 }
  0x22   :  { %v283_v36 = vpop.eup %282  ;;  %v85_v37 = vmul.f32 0.6931472, %v281_v32  ;;  %v97_v38 = vadd.f32 0.9189385, %v81_v29  ;;  %302 = vrcp.f32 %v135_v22 }
  0x23   :  { %v285_v40 = vpop.eup %284  ;;  %v87_v41 = vmul.f32 0.6931472, %v283_v36  ;;  %v98_v42 = vadd.f32 0.9189385, %v83_v33  ;;  %304 = vrcp.f32 %v136_v27  ;;  %v121_v47 = vmul.f32 %v109_v26, %v96_v34 }
  0x24   :  { %v287_v44 = vpop.eup %286  ;;  %v89_v45 = vmul.f32 0.6931472, %v285_v40  ;;  %v99_v46 = vadd.f32 0.9189385, %v85_v37  ;;  %306 = vrcp.f32 %v137_v31  ;;  %v122_v51 = vmul.f32 %v113_v30, %v97_v38 }
  0x25   :  { %v289_v48 = vpop.eup %288  ;;  %v91_v49 = vmul.f32 0.6931472, %v287_v44  ;;  %v100_v50 = vadd.f32 0.9189385, %v87_v41  ;;  %308 = vrcp.f32 %v138_v35  ;;  %v123_v55 = vmul.f32 %v117_v39, %v98_v42 }
  0x26   :  { %v291_v52 = vpop.eup %290  ;;  %v93_v53 = vmul.f32 0.6931472, %v289_v48  ;;  %v101_v54 = vadd.f32 0.9189385, %v89_v45  ;;  %v124_v59 = vmul.f32 %v109_v26, %v99_v46 }
  0x27   :  { %v293_v56 = vpop.eup %292  ;;  %v95_v57 = vmul.f32 0.6931472, %v291_v52  ;;  %v102_v58 = vadd.f32 0.9189385, %v91_v49  ;;  %v125_v62 = vmul.f32 %v113_v30, %v100_v50 }
  0x28   :  { %v295_v60 = vpop.eup %294  ;;  %v103_v61 = vadd.f32 0.9189385, %v93_v53  ;;  %v148_v63 = vmul.f32 %v293_v56, %v121_v47  ;;  %v126_v2 = vmul.f32 %v117_v39, %v101_v54 }
  0x29   :  { %v297_v0 = vpop.eup %296  ;;  %v104_v1 = vadd.f32 0.9189385, %v95_v57  ;;  %v149_v3 = vmul.f32 %v295_v60, %v122_v51  ;;  %v127_v5 = vmul.f32 %v109_v26, %v102_v58  ;;  %v178_v26 = vld [vmem:[#allocation2 + $0x40] sm:$0x1] }
  0x2a   :  { %v299_v4 = vpop.eup %298  ;;  %v150_v6 = vmul.f32 %v297_v0, %v123_v55  ;;  %v128_v8 = vmul.f32 %v113_v30, %v103_v61 }
  0x2b   :  { %v301_v7 = vpop.eup %300  ;;  %v151_v9 = vmul.f32 %v299_v4, %v124_v59  ;;  %v129_v11 = vmul.f32 %v117_v39, %v104_v1  ;;  %v224_v17 = vadd.f32 %v149_v3, %v148_v63 }
  0x2c   :  { %v303_v10 = vpop.eup %302  ;;  %v152_v12 = vmul.f32 %v301_v7, %v125_v62  ;;  %v187_v13 = vsel %vm169_vm0, %v150_v6, 0.0 }
  0x2d   :  { %v305_v14 = vpop.eup %304  ;;  %v153_v15 = vmul.f32 %v303_v10, %v126_v2  ;;  %v225_v24 = vadd.f32 %v224_v17, %v187_v13 }
  0x2e   :  { %v307_v18 = vpop.eup %306  ;;  %v154_v19 = vmul.f32 %v305_v14, %v127_v5 }
  0x2f   :  { %v309_v21 = vpop.eup %308  ;;  %v155_v22 = vmul.f32 %v307_v18, %v128_v8  ;;  %v190_v23 = vsel %vm169_vm0, %v153_v15, 0.0  ;;  %v226_v29 = vadd.f32 %v225_v24, %v151_v9 }
  0x30   :  { %v156_v25 = vmul.f32 %v309_v21, %v129_v11  ;;  %v200_v27 = vadd.f32 %v176_v16, %v154_v19 }
  0x31   :  { %v201_v28 = vadd.f32 %v177_v20, %v155_v22  ;;  %v227_v32 = vadd.f32 %v226_v29, %v152_v12 }
  0x32   :  { %v193_v30 = vsel %vm169_vm0, %v156_v25, 0.0  ;;  %209 = vst [vmem:[#allocation2 + $0x30] sm:$0x1] %v200_v27 }
  0x33   :  { %v202_v31 = vadd.f32 %v193_v30, %v178_v26  ;;  %210 = vst [vmem:[#allocation2 + $0x38] sm:$0x1] %v201_v28  ;;  %v228_v33 = vadd.f32 %v227_v32, %v190_v23 }
  0x35   :  { %211 = vst [vmem:[#allocation2 + $0x40] sm:$0x1] %v202_v31 }
  0x39   :  { %v221_v34 = vld [vmem:[#allocation2 + $0x30] sm:$0x1] }
  0x3a   :  { %v222_v35 = vld [vmem:[#allocation2 + $0x38] sm:$0x1]  ;;  %v230_v36 = vsel %vm229_vm1, %v221_v34, 0.0 }
  0x3b   :  { %v231_v37 = vadd.f32 %v230_v36, %v228_v33  ;;  %v232_v38 = vsel %vm229_vm1, %v222_v35, 0.0 }
  0x3c   :  { %v223_v39 = vld [vmem:[#allocation2 + $0x40] sm:$0x1] }
  0x3d   :  { %v233_v40 = vadd.f32 %v232_v38, %v231_v37  ;;  %v234_v41 = vsel %vm229_vm1, %v223_v39, 0.0 }
  0x3f   :  { %v235_v42 = vadd.f32 %v234_v41, %v233_v40 }
  0x41   :  { %236 = vadd.xlane.f32.xlu0 %v235_v42 }
  0xce   :  { %v237_v44 = vpop.xlane.xlu0 %236 }
  0xcf   :  { %v238_v43 = vrot.slane %v237_v44, 4 }
  0xd1   :  { %v239_v45 = vadd.f32 %v238_v43, %v237_v44 }
  0xd3   :  { %v240_v46 = vrot.slane %v239_v45, 2 }
  0xd5   :  { %v241_v47 = vadd.f32 %v240_v46, %v239_v45 }
  0xd7   :  { %v242_v48 = vrot.slane %v241_v47, 1 }
  0xd9   :  { %v243_v49 = vadd.f32 %v242_v48, %v241_v47 }
  0xdb   :  { %267 = vpush %v243_v49 }
 0x10c   :  { %s268_s28 = spop %267 }
 0x10d   :  { %s246_s4 = smul.f32 %s268_s28, %s418_s2 }
 0x10f   :  { %v247_v50 = vstv %s246_s4 }
 0x110   :  { %248 = vst [vmem:[#allocation7] sm:$0xff] %v247_v50 }
 0x111   :  { %343 = shalt.err (!%p340_p12)
}
 0x112   :  { %s344_s8 = scalar_lea.hbm %s419_s3, 128 }
 0x113   :  { %p345_p13 = scmp.ne.s32.totalorder %s419_s3, %s344_s8  ;;  %p348_p0 = scmp.lt.u32.totalorder %s344_s8, %s419_s3 }
 0x115   :  { %p350_p1 = pnand %p348_p0, %p345_p13 }
 0x117   :  { %353 = shalt.err (!%p350_p1)
}
 0x118   :  { %258 = dma.vmem_to_hbm [thread:$0]  %s256_s27, 128, %s419_s3, [#allocation6]  }
 0x119   :  { %356 = dma.done.wait [#allocation6], 128  }
 0x11a   :  { %357 = vsyncadd [#allocation6], 4294967168 }
 0x11b   :  { %262 = vsyncpa [#allocation5], 1 }
 0x11c   :  { %263 = vsyncpa [#allocation6], 1 }

</bundles_post_ra>
